<compile_context>
chip_gen: v6e
topology: v6e:2x2x1
jax: 0.10.0
libtpu: 0.0.40
codegen_flags: <defaults>
</compile_context>

<pallas_src>
import functools

import jax
import jax.numpy as jnp
from jax.experimental import pallas as pl
from jax.experimental.pallas import tpu as pltpu


# ----------------------------------------------------------------------------
# Kernel
# ----------------------------------------------------------------------------
def _make_attn_kernel(heads: int, dim_head: int, project_out: bool, matmul_dtype):
    scale = dim_head ** (-0.5)
    inner = heads * dim_head

    def body(x_ref, wqkv_ref, mask_ref, wout_ref, bout_ref, o_ref):
        # (1) Fused QKV projection: ONE lane-dense 2-D matmul over the folded
        #     (batch*seq) rows.
        x = x_ref[...].astype(matmul_dtype)                       # (BN, D)
        qkv = jnp.dot(x, wqkv_ref[...].astype(matmul_dtype),
                      preferred_element_type=jnp.float32)          # (BN, 3*inner) f32

        # (2) Single relayout of the small QKV result to head-batched layout
        #     (H, BN, dh).  Static lane slices + stack (robust Mosaic lowering).
        def heads_of(chunk):                                       # chunk: 0=q 1=k 2=v
            base = chunk * inner
            return jnp.stack(
                [qkv[:, base + h * dim_head: base + (h + 1) * dim_head]
                 for h in range(heads)], axis=0)                   # (H, BN, dh)

        q, k, v = heads_of(0), heads_of(1), heads_of(2)

        # (3) Head-batched attention over the folded rows.  The additive
        #     block-diagonal mask (0 within a sequence, -1e30 across sequences)
        #     keeps the batch elements independent, matching per-batch softmax.
        dots = jnp.einsum("hnd,hmd->hnm",
                          q.astype(matmul_dtype), k.astype(matmul_dtype),
                          preferred_element_type=jnp.float32) * scale   # (H, BN, BN)
        dots = dots + mask_ref[...]                                 # bcast over H
        dots = dots - jnp.max(dots, axis=-1, keepdims=True)
        e = jnp.exp(dots)                                           # f32 (v5e-safe)
        # exact reciprocal (EUP slot) -> strict parity with jax.nn.softmax
        attn = e * pl.reciprocal(jnp.sum(e, axis=-1, keepdims=True), approx=False)

        ctx = jnp.einsum("hnm,hmd->hnd",
                         attn.astype(matmul_dtype), v.astype(matmul_dtype),
                         preferred_element_type=jnp.float32)        # (H, BN, dh)

        # (4) 'b h n d -> b n (h d)' + fused output projection: ONE 2-D matmul
        #     with contraction = inner (no per-head pushes, no cross-head reduce).
        ctx_flat = jnp.concatenate([ctx[h] for h in range(heads)], axis=-1)  # (BN, inner)
        if project_out:
            out = jnp.dot(ctx_flat.astype(matmul_dtype),
                          wout_ref[...].astype(matmul_dtype),
                          preferred_element_type=jnp.float32) + bout_ref[...]
        else:
            out = ctx_flat                                          # to_out is Identity
        # nn.Dropout(p=0.0) == identity (eval semantics): nothing to do.

        # (5) Unmasked, lane-dense store (output columns padded to a multiple of
        #     128 wrapper-side when the projection is present).
        o_ref[...] = out.astype(o_ref.dtype)

    if project_out:
        def kernel(x_ref, wqkv_ref, mask_ref, wout_ref, bout_ref, o_ref):
            body(x_ref, wqkv_ref, mask_ref, wout_ref, bout_ref, o_ref)
    else:
        def kernel(x_ref, wqkv_ref, mask_ref, o_ref):
            body(x_ref, wqkv_ref, mask_ref, None, None, o_ref)
    return kernel


# ----------------------------------------------------------------------------
# Wrapper
# ----------------------------------------------------------------------------
def attention_forward(x, params, heads, dim_head, matmul_dtype=jnp.float32):
    """Attention.forward.  x: (B, N, D).  params = (wqkv, wout, bout) with
    wqkv: (D, 3*H*dh)   [x @ wqkv == PyTorch to_qkv(x)],
    wout: (H*dh, D), bout: (D,)   [to_out Linear; ignored if project_out=False].

    matmul_dtype=jnp.bfloat16 is recommended on v6e/v7x at real sizes (MXU runs
    at native rate); accumulation and all softmax math stay f32 regardless."""
    B, N, D = x.shape
    inner = heads * dim_head
    project_out = not (heads == 1 and dim_head == D)
    wqkv, wout, bout = params

    BN = B * N
    x_flat = x.reshape(BN, D)                        # fold batch into rows (free)

    # Additive block-diagonal mask: 0 within a sequence, -1e30 across sequences.
    # Shape-only -> constant-folded under jit.
    row_batch = jnp.arange(BN, dtype=jnp.int32) // N
    neg_mask = jnp.where(row_batch[:, None] == row_batch[None, :],
                         0.0, -1e30).astype(jnp.float32)           # (BN, BN)

    if project_out:
        d_pad = ((D + 127) // 128) * 128            # lane-dense output columns
        wout_p = jnp.pad(wout, ((0, 0), (0, d_pad - D)))            # (inner, d_pad)
        bout_p = jnp.pad(bout, (0, d_pad - D)).reshape(1, d_pad)    # (1, d_pad)
        inputs = (x_flat, wqkv, neg_mask, wout_p, bout_p)
        out_w = d_pad
    else:
        inputs = (x_flat, wqkv, neg_mask)
        out_w = inner                                # == D in this case

    kernel = _make_attn_kernel(heads, dim_head, project_out, matmul_dtype)

    # Advisory cost estimate so XLA schedules this small custom call correctly.
    flops = (2 * BN * D * 3 * inner                  # QKV projection
             + 2 * heads * BN * BN * dim_head * 2)   # QK^T + attn@V
    if project_out:
        flops += 2 * BN * inner * out_w              # output projection
    transcendentals = heads * BN * BN + heads * BN   # exp + reciprocal
    bytes_accessed = 4 * (sum(int(a.size) for a in inputs) + BN * out_w)

    out = pl.pallas_call(
        kernel,
        out_shape=jax.ShapeDtypeStruct((BN, out_w), x.dtype),
        in_specs=[pl.BlockSpec(memory_space=pltpu.MemorySpace.VMEM)] * len(inputs),
        out_specs=pl.BlockSpec(memory_space=pltpu.MemorySpace.VMEM),
        cost_estimate=pl.CostEstimate(flops=flops,
                                      transcendentals=transcendentals,
                                      bytes_accessed=bytes_accessed),
    )(*inputs)

    if project_out:
        out = out[:, :D]                             # drop lane padding (free, outside kernel)
    return out.reshape(B, N, -1)


# ----------------------------------------------------------------------------
# Pure-JAX reference (mirrors the PyTorch Attention.forward exactly)
# ----------------------------------------------------------------------------
def reference_attention(x, wqkv, wout, bout, heads, dim_head):
    B, N, D = x.shape
    inner = heads * dim_head
    scale = dim_head ** (-0.5)
    qkv = x @ wqkv                                    # to_qkv (no bias)
    q, k, v = jnp.split(qkv, 3, axis=-1)

    def split_heads(t):                               # 'b n (h d) -> b h n d'
        return t.reshape(B, N, heads, dim_head).transpose(0, 2, 1, 3)

    q, k, v = map(split_heads, (q, k, v))
    dots = jnp.einsum("bhnd,bhmd->bhnm", q, k) * scale
    attn = jax.nn.softmax(dots, axis=-1)
    out = jnp.einsum("bhnm,bhmd->bhnd", attn, v)
    out = out.transpose(0, 2, 1, 3).reshape(B, N, inner)   # 'b h n d -> b n (h d)'
    if heads == 1 and dim_head == D:                  # project_out=False -> Identity
        return out
    return out @ wout + bout                          # to_out Linear (+ Dropout p=0)


# ----------------------------------------------------------------------------
if __name__ == "__main__":
    B, N = 2, 8
    dim, heads, dim_head = 32, 4, 8
    inner = heads * dim_head

    key = jax.random.PRNGKey(0)
    kx, k1, k2, k3 = jax.random.split(key, 4)
    x = jax.random.normal(kx, (B, N, dim), jnp.float32)
    wqkv = jax.random.normal(k1, (dim, 3 * inner), jnp.float32) * 0.05
    wout = jax.random.normal(k2, (inner, dim), jnp.float32) * 0.05
    bout = jax.random.normal(k3, (dim,), jnp.float32) * 0.05

    fwd = jax.jit(functools.partial(attention_forward, heads=heads, dim_head=dim_head))
    out = jax.block_until_ready(fwd(x, (wqkv, wout, bout)))

    ref = reference_attention(x, wqkv, wout, bout, heads, dim_head)
    assert out.shape == (B, N, dim)
    max_err = float(jnp.max(jnp.abs(out - ref)))
    assert jnp.allclose(out, ref, atol=2e-3, rtol=2e-3), \
        f"mismatch vs reference (max abs err {max_err})"

    print("KERNEL_OK")
</pallas_src>

<mosaic_0001>
module attributes {stable_mosaic.version = 11 : i64} {
  func.func @kernel(%arg0: memref<16x32xf32, #tpu.memory_space<vmem>>, %arg1: memref<32x96xf32, #tpu.memory_space<vmem>>, %arg2: memref<16x16xf32, #tpu.memory_space<vmem>>, %arg3: memref<32x128xf32, #tpu.memory_space<vmem>>, %arg4: memref<1x128xf32, #tpu.memory_space<vmem>>, %arg5: memref<16x128xf32, #tpu.memory_space<vmem>>) attributes {dimension_semantics = [], scalar_prefetch = 0 : i64, scratch_operands = 0 : i64, tpu.core_type = #tpu.core_type<tc>} {
    %c0 = arith.constant 0 : index
    %c0_0 = arith.constant 0 : index
    %0 = vector.load %arg0[%c0, %c0_0] : memref<16x32xf32, #tpu.memory_space<vmem>>, vector<16x32xf32>
    %c0_1 = arith.constant 0 : index
    %c0_2 = arith.constant 0 : index
    %1 = vector.load %arg1[%c0_1, %c0_2] : memref<32x96xf32, #tpu.memory_space<vmem>>, vector<32x96xf32>
    %cst = arith.constant dense<0.000000e+00> : vector<16x96xf32>
    %2 = tpu.matmul %0, %1, %cst {dimension_numbers = #tpu.dot_dimension_numbers<[1], [0], [0], [1], [0, 0, 1, 1], [], []>} : vector<16x32xf32>, vector<32x96xf32>, vector<16x96xf32> -> vector<16x96xf32>
    %3 = vector.extract_strided_slice %2 {offsets = [0, 0], sizes = [16, 8], strides = [1, 1]} : vector<16x96xf32> to vector<16x8xf32>
    %4 = vector.extract_strided_slice %2 {offsets = [0, 8], sizes = [16, 8], strides = [1, 1]} : vector<16x96xf32> to vector<16x8xf32>
    %5 = vector.extract_strided_slice %2 {offsets = [0, 16], sizes = [16, 8], strides = [1, 1]} : vector<16x96xf32> to vector<16x8xf32>
    %6 = vector.extract_strided_slice %2 {offsets = [0, 24], sizes = [16, 8], strides = [1, 1]} : vector<16x96xf32> to vector<16x8xf32>
    %7 = vector.shape_cast %3 : vector<16x8xf32> to vector<1x16x8xf32>
    %8 = vector.shape_cast %4 : vector<16x8xf32> to vector<1x16x8xf32>
    %9 = vector.shape_cast %5 : vector<16x8xf32> to vector<1x16x8xf32>
    %10 = vector.shape_cast %6 : vector<16x8xf32> to vector<1x16x8xf32>
    %11 = tpu.concatenate %7, %8, %9, %10 in 0 : vector<1x16x8xf32>, vector<1x16x8xf32>, vector<1x16x8xf32>, vector<1x16x8xf32> -> vector<4x16x8xf32>
    %12 = vector.extract_strided_slice %2 {offsets = [0, 32], sizes = [16, 8], strides = [1, 1]} : vector<16x96xf32> to vector<16x8xf32>
    %13 = vector.extract_strided_slice %2 {offsets = [0, 40], sizes = [16, 8], strides = [1, 1]} : vector<16x96xf32> to vector<16x8xf32>
    %14 = vector.extract_strided_slice %2 {offsets = [0, 48], sizes = [16, 8], strides = [1, 1]} : vector<16x96xf32> to vector<16x8xf32>
    %15 = vector.extract_strided_slice %2 {offsets = [0, 56], sizes = [16, 8], strides = [1, 1]} : vector<16x96xf32> to vector<16x8xf32>
    %16 = vector.shape_cast %12 : vector<16x8xf32> to vector<1x16x8xf32>
    %17 = vector.shape_cast %13 : vector<16x8xf32> to vector<1x16x8xf32>
    %18 = vector.shape_cast %14 : vector<16x8xf32> to vector<1x16x8xf32>
    %19 = vector.shape_cast %15 : vector<16x8xf32> to vector<1x16x8xf32>
    %20 = tpu.concatenate %16, %17, %18, %19 in 0 : vector<1x16x8xf32>, vector<1x16x8xf32>, vector<1x16x8xf32>, vector<1x16x8xf32> -> vector<4x16x8xf32>
    %21 = vector.extract_strided_slice %2 {offsets = [0, 64], sizes = [16, 8], strides = [1, 1]} : vector<16x96xf32> to vector<16x8xf32>
    %22 = vector.extract_strided_slice %2 {offsets = [0, 72], sizes = [16, 8], strides = [1, 1]} : vector<16x96xf32> to vector<16x8xf32>
    %23 = vector.extract_strided_slice %2 {offsets = [0, 80], sizes = [16, 8], strides = [1, 1]} : vector<16x96xf32> to vector<16x8xf32>
    %24 = vector.extract_strided_slice %2 {offsets = [0, 88], sizes = [16, 8], strides = [1, 1]} : vector<16x96xf32> to vector<16x8xf32>
    %25 = vector.shape_cast %21 : vector<16x8xf32> to vector<1x16x8xf32>
    %26 = vector.shape_cast %22 : vector<16x8xf32> to vector<1x16x8xf32>
    %27 = vector.shape_cast %23 : vector<16x8xf32> to vector<1x16x8xf32>
    %28 = vector.shape_cast %24 : vector<16x8xf32> to vector<1x16x8xf32>
    %29 = tpu.concatenate %25, %26, %27, %28 in 0 : vector<1x16x8xf32>, vector<1x16x8xf32>, vector<1x16x8xf32>, vector<1x16x8xf32> -> vector<4x16x8xf32>
    "tpu.trace_start"() <{level = 10 : i32, message = "hnd,hmd->hnm"}> : () -> ()
    %cst_3 = arith.constant dense<0.000000e+00> : vector<4x16x16xf32>
    %30 = tpu.matmul %11, %20, %cst_3 {dimension_numbers = #tpu.dot_dimension_numbers<[2], [2], [1], [1], [0, 0, 0, 1, 1, 1], [0], [0]>} : vector<4x16x8xf32>, vector<4x16x8xf32>, vector<4x16x16xf32> -> vector<4x16x16xf32>
    "tpu.trace_stop"() : () -> ()
    %cst_4 = arith.constant 0.353553385 : f32
    %31 = vector.broadcast %cst_4 : f32 to vector<4x16x16xf32>
    %32 = arith.mulf %30, %31 : vector<4x16x16xf32>
    %c0_5 = arith.constant 0 : index
    %c0_6 = arith.constant 0 : index
    %33 = vector.load %arg2[%c0_5, %c0_6] : memref<16x16xf32, #tpu.memory_space<vmem>>, vector<16x16xf32>
    %34 = vector.shape_cast %33 : vector<16x16xf32> to vector<1x16x16xf32>
    %35 = vector.broadcast %34 : vector<1x16x16xf32> to vector<4x16x16xf32>
    %36 = arith.addf %32, %35 : vector<4x16x16xf32>
    %cst_7 = arith.constant dense<0xFF800000> : vector<4x16xf32>
    %37 = vector.multi_reduction <maximumf>, %36, %cst_7 [2] : vector<4x16x16xf32> to vector<4x16xf32>
    %38 = vector.shape_cast %37 : vector<4x16xf32> to vector<4x16x1xf32>
    %39 = vector.broadcast %38 : vector<4x16x1xf32> to vector<4x16x16xf32>
    %40 = arith.subf %36, %39 : vector<4x16x16xf32>
    %41 = math.exp %40 : vector<4x16x16xf32>
    %cst_8 = arith.constant dense<0.000000e+00> : vector<4x16xf32>
    %42 = vector.multi_reduction <add>, %41, %cst_8 [2] : vector<4x16x16xf32> to vector<4x16xf32>
    %43 = vector.shape_cast %42 : vector<4x16xf32> to vector<4x16x1xf32>
    %44 = tpu.reciprocal %43 : vector<4x16x1xf32> -> vector<4x16x1xf32>
    %45 = vector.broadcast %44 : vector<4x16x1xf32> to vector<4x16x16xf32>
    %46 = arith.mulf %41, %45 : vector<4x16x16xf32>
    "tpu.trace_start"() <{level = 10 : i32, message = "hnm,hmd->hnd"}> : () -> ()
    %cst_9 = arith.constant dense<0.000000e+00> : vector<4x16x8xf32>
    %47 = tpu.matmul %46, %29, %cst_9 {dimension_numbers = #tpu.dot_dimension_numbers<[2], [1], [1], [2], [0, 0, 0, 1, 1, 2], [0], [0]>} : vector<4x16x16xf32>, vector<4x16x8xf32>, vector<4x16x8xf32> -> vector<4x16x8xf32>
    "tpu.trace_stop"() : () -> ()
    %48 = vector.extract_strided_slice %47 {offsets = [0, 0, 0], sizes = [1, 16, 8], strides = [1, 1, 1]} : vector<4x16x8xf32> to vector<1x16x8xf32>
    %49 = vector.shape_cast %48 : vector<1x16x8xf32> to vector<16x8xf32>
    %50 = vector.extract_strided_slice %47 {offsets = [1, 0, 0], sizes = [1, 16, 8], strides = [1, 1, 1]} : vector<4x16x8xf32> to vector<1x16x8xf32>
    %51 = vector.shape_cast %50 : vector<1x16x8xf32> to vector<16x8xf32>
    %52 = vector.extract_strided_slice %47 {offsets = [2, 0, 0], sizes = [1, 16, 8], strides = [1, 1, 1]} : vector<4x16x8xf32> to vector<1x16x8xf32>
    %53 = vector.shape_cast %52 : vector<1x16x8xf32> to vector<16x8xf32>
    %54 = vector.extract_strided_slice %47 {offsets = [3, 0, 0], sizes = [1, 16, 8], strides = [1, 1, 1]} : vector<4x16x8xf32> to vector<1x16x8xf32>
    %55 = vector.shape_cast %54 : vector<1x16x8xf32> to vector<16x8xf32>
    %56 = tpu.concatenate %49, %51, %53, %55 in 1 : vector<16x8xf32>, vector<16x8xf32>, vector<16x8xf32>, vector<16x8xf32> -> vector<16x32xf32>
    %c0_10 = arith.constant 0 : index
    %c0_11 = arith.constant 0 : index
    %57 = vector.load %arg3[%c0_10, %c0_11] : memref<32x128xf32, #tpu.memory_space<vmem>>, vector<32x128xf32>
    %cst_12 = arith.constant dense<0.000000e+00> : vector<16x128xf32>
    %58 = tpu.matmul %56, %57, %cst_12 {dimension_numbers = #tpu.dot_dimension_numbers<[1], [0], [0], [1], [0, 0, 1, 1], [], []>} : vector<16x32xf32>, vector<32x128xf32>, vector<16x128xf32> -> vector<16x128xf32>
    %c0_13 = arith.constant 0 : index
    %c0_14 = arith.constant 0 : index
    %59 = vector.load %arg4[%c0_13, %c0_14] : memref<1x128xf32, #tpu.memory_space<vmem>>, vector<1x128xf32>
    %60 = vector.broadcast %59 : vector<1x128xf32> to vector<16x128xf32>
    %61 = arith.addf %58, %60 : vector<16x128xf32>
    %c0_15 = arith.constant 0 : index
    %c0_16 = arith.constant 0 : index
    %62 = vector.load %arg5[%c0_15, %c0_16] : memref<16x128xf32, #tpu.memory_space<vmem>>, vector<16x128xf32>
    tpu.vector_store %arg5[%c0_15, %c0_16], %61 {strides = array<i32>} : memref<16x128xf32, #tpu.memory_space<vmem>>, vector<16x128xf32>,
    return
  }
}

</mosaic_0001>

<bundles_post_ra>
// kernel: attention_forward.1
= control target key start
LH: loop header
LB: loop body
LE: loop exit
PB: predicated region body
PF: predicated region fallthrough
CT: control target
= control target key end

     0   :  { %vm26_vm0 = vcmask 261120   ;;  %vm126_vm1 = vcmask 64512   ;;  %s1246_s30 = smov 112   ;;  %s1247_s6 = smov 120   ;;  %vm489_vm2 = vcmask 130048   ;;  %vm954_vm3 = vcmask 195584   ;;  %s1447_s1 = inlined_call_operand.vmem [shape: f32[32,96], index: 1, kind: input, shape index: {}]   ;;  %s1448_s0 = inlined_call_operand.vmem [shape: f32[16,32], index: 0, kind: input, shape index: {}]   ;;  %s1449_s2 = inlined_call_operand.vmem [shape: f32[16,16], index: 2, kind: input, shape index: {}]   ;;  %s1450_s3 = inlined_call_operand.vmem [shape: f32[32,128], index: 3, kind: input, shape index: {}]   ;;  %s1451_s4 = inlined_call_operand.vmem [shape: f32[1,128], index: 4, kind: input, shape index: {}]   ;;  %s1452_s5 = inlined_call_operand.vmem [shape: f32[16,128], index: 5, kind: output, shape index: {}]  }
   0x1   :  { %v25_v0 = vld [vmem:[%s1447_s1 + $0x18] sm:$0xff]  ;;  %v24_v1 = vld [vmem:[%s1447_s1 + $0x10] sm:$0xff]  ;;  %v20_v2 = vld [vmem:[%s1448_s0] sm:$0xff]  ;;  %s1251_s19 = smov 8   ;;  %s1252_s20 = smov 16  }
   0x2   :  { %1128 = vmatprep.subr.mxu0 %v25_v0  ;;  %v23_v3 = vld [vmem:[%s1447_s1 + $0x8] sm:$0xff]  ;;  %1136 = vmatprep.mubr.msk.f32.mxu0 %vm26_vm0, %v20_v2  ;;  %v22_v4 = vld [vmem:[%s1447_s1] sm:$0xff]  ;;  %s1249_s1 = smov 96   ;;  %s1253_s21 = smov 24  }
   0x3   :  { %1129 = vmatpush3.msra.mxu0 %v25_v0  ;;  %v21_v5 = vld [vmem:[%s1448_s0 + $0x8] sm:$0xff]  ;;  %s1248_s0 = smov 104   ;;  %v479_v26 = vld [vmem:[%s1449_s2] sm:$0xff] }
   0x4   :  { %1130 = vmatprep.subr.mxu0 %v24_v1  ;;  %v480_v23 = vld [vmem:[%s1449_s2 + $0x8] sm:$0xff]  ;;  %s1250_s2 = smov 64  }
   0x5   :  { %1131 = vmatpush3.msra.mxu0 %v24_v1 }
   0x6   :  { %1132 = vmatprep.subr.mxu0 %v23_v3 }
   0x7   :  { %1133 = vmatpush3.msra.mxu0 %v23_v3 }
   0x8   :  { %1134 = vmatprep.subr.mxu0 %v22_v4 }
   0x9   :  { %1135 = vmatpush3.msra.mxu0 %v22_v4 }
   0xa   :  { %1137 = vmatmul.mubr.msk.f32.vlgmr.msra.gmra.mxu0 %vm26_vm0, %v21_v5 }
  0xca   :  { %v1304_v6 = vpop.f32.mrf.mxu0 }
  0xcb   :  { %116 = vrot.lane.b32.xlu1 %v1304_v6, %s1246_s30  ;;  %112 = vrot.lane.b32.xlu0 %v1304_v6, %s1247_s6 }
  0xcc   :  { %v1308_v7 = vpop.f32.mrf.mxu0 }
  0xcd   :  { %1143 = vmatprep.mubr.msk.f32.mxu1 %vm126_vm1, %v1308_v7 }
  0xcf   :  { %114 = vrot.lane.b32.xlu1 %v1308_v7, %s1246_s30  ;;  %110 = vrot.lane.b32.xlu0 %v1308_v7, %s1247_s6 }
  0xd3   :  { %118 = vrot.lane.b32.xlu1 %v1308_v7, %s1248_s0  ;;  %120 = vrot.lane.b32.xlu0 %v1304_v6, %s1248_s0 }
  0xd7   :  { %122 = vrot.lane.b32.xlu1 %v1308_v7, %s1249_s1  ;;  %124 = vrot.lane.b32.xlu0 %v1304_v6, %s1249_s1 }
 0x13d   :  { %v1318_v8 = vpop.permute.xlu1 %116  ;;  %v1320_v9 = vpop.permute.xlu0 %112 }
 0x13e   :  { %212 = vrot.lane.b32.xlu0 %v1320_v9, %s1249_s1 }
 0x141   :  { %v1323_v10 = vpop.permute.xlu1 %114  ;;  %v1325_v11 = vpop.permute.xlu0 %110 }
 0x142   :  { %299 = vrot.lane.b32.xlu0 %v1318_v8, %s1249_s1  ;;  %1150 = vmatprep.mubr.msk.f32.mxu0 %vm126_vm1, %v1325_v11 }
 0x143   :  { %210 = vrot.lane.b32.xlu1 %v1325_v11, %s1249_s1 }
 0x145   :  { %v1331_v12 = vpop.permute.xlu1 %118  ;;  %v1333_v13 = vpop.permute.xlu0 %120 }
 0x146   :  { %386 = vrot.lane.b32.xlu0 %v1333_v13, %s1249_s1 }
 0x147   :  { %297 = vrot.lane.b32.xlu1 %v1323_v10, %s1249_s1 }
 0x149   :  { %v125_v14 = vpop.permute.xlu0 %124  ;;  %v123_v15 = vpop.permute.xlu1 %122 }
 0x14a   :  { %1139 = vmatprep.subr.msk.mxu1 %vm126_vm1, %v125_v14 }
 0x14b   :  { %384 = vrot.lane.b32.xlu1 %v1331_v12, %s1249_s1  ;;  %1140 = vmatpush3.xpose.msk.msra.mxu1 %vm126_vm1, %v125_v14 }
 0x14c   :  { %1141 = vmatprep.subr.msk.mxu1 %vm126_vm1, %v123_v15 }
 0x14f   :  { %1142 = vmatpush3.xpose.msk.msra.mxu1 %vm126_vm1, %v123_v15 }
 0x152   :  { %1144 = vmatmul.mubr.msk.f32.vlgmr.msra.gmra.mxu1 %vm126_vm1, %v1304_v6 }
 0x153   :  { %1157 = vmatprep.mubr.msk.f32.mxu1 %vm126_vm1, %v1323_v10 }
 0x1b0   :  { %v213_v16 = vpop.permute.xlu0 %212 }
 0x1b1   :  { %1146 = vmatprep.subr.msk.mxu0 %vm126_vm1, %v213_v16 }
 0x1b2   :  { %1147 = vmatpush3.xpose.msk.msra.mxu0 %vm126_vm1, %v213_v16 }
 0x1b4   :  { %v300_v17 = vpop.permute.xlu0 %299 }
 0x1b5   :  { %v211_v18 = vpop.permute.xlu1 %210  ;;  %1153 = vmatprep.subr.msk.mxu1 %vm126_vm1, %v300_v17 }
 0x1b6   :  { %1148 = vmatprep.subr.msk.mxu0 %vm126_vm1, %v211_v18  ;;  %1154 = vmatpush3.xpose.msk.msra.mxu1 %vm126_vm1, %v300_v17 }
 0x1b7   :  { %1149 = vmatpush3.xpose.msk.msra.mxu0 %vm126_vm1, %v211_v18 }
 0x1b8   :  { %v387_v19 = vpop.permute.xlu0 %386 }
 0x1b9   :  { %v298_v20 = vpop.permute.xlu1 %297  ;;  %1160 = vmatprep.subr.msk.mxu0 %vm126_vm1, %v387_v19 }
 0x1ba   :  { %1151 = vmatmul.mubr.msk.f32.vlgmr.msra.gmra.mxu0 %vm126_vm1, %v1320_v9  ;;  %1155 = vmatprep.subr.msk.mxu1 %vm126_vm1, %v298_v20 }
 0x1bb   :  { %1156 = vmatpush3.xpose.msk.msra.mxu1 %vm126_vm1, %v298_v20  ;;  %1161 = vmatpush3.xpose.msk.msra.mxu0 %vm126_vm1, %v387_v19 }
 0x1bc   :  { %1164 = vmatprep.mubr.msk.f32.mxu0 %vm126_vm1, %v1331_v12 }
 0x1bd   :  { %v385_v21 = vpop.permute.xlu1 %384 }
 0x1be   :  { %1158 = vmatmul.mubr.msk.f32.vlgmr.msra.gmra.mxu1 %vm126_vm1, %v1318_v8  ;;  %1162 = vmatprep.subr.msk.mxu0 %vm126_vm1, %v385_v21 }
 0x1bf   :  { %1163 = vmatpush3.xpose.msk.msra.mxu0 %vm126_vm1, %v385_v21 }
 0x1c2   :  { %1165 = vmatmul.mubr.msk.f32.vlgmr.msra.gmra.mxu0 %vm126_vm1, %v1333_v13 }
 0x212   :  { %v1145_v22 = vpop.f32.mrf.mxu1 }
 0x213   :  { %v472_v24 = vmul.f32 0.35355338, %v1145_v22 }
 0x214   :  { %v201_v25 = vpop.f32.mrf.mxu1 }
 0x215   :  { %v471_v27 = vmul.f32 0.35355338, %v201_v25  ;;  %v482_v28 = vadd.f32 %v480_v23, %v472_v24 }
 0x217   :  { %v493_v29 = vsel %vm489_vm2, %v482_v28, -inf  ;;  %v481_v30 = vadd.f32 %v479_v26, %v471_v27 }
 0x218   :  { %494 = vmax.xlane.f32.xlu1 %v493_v29 }
 0x219   :  { %v490_v31 = vsel %vm489_vm2, %v481_v30, -inf }
 0x21a   :  { %491 = vmax.xlane.f32.xlu0 %v490_v31 }
 0x27a   :  { %v1152_v32 = vpop.f32.mrf.mxu0 }
 0x27b   :  { %v474_v33 = vmul.f32 0.35355338, %v1152_v32 }
 0x27c   :  { %v288_v34 = vpop.f32.mrf.mxu0 }
 0x27d   :  { %v473_v35 = vmul.f32 0.35355338, %v288_v34  ;;  %v484_v39 = vadd.f32 %v480_v23, %v474_v33 }
 0x27e   :  { %v1159_v36 = vpop.f32.mrf.mxu1 }
 0x27f   :  { %v483_v37 = vadd.f32 %v479_v26, %v473_v35  ;;  %v476_v40 = vmul.f32 0.35355338, %v1159_v36  ;;  %v499_v46 = vsel %vm489_vm2, %v484_v39, -inf }
 0x280   :  { %v375_v38 = vpop.f32.mrf.mxu1 }
 0x281   :  { %v475_v41 = vmul.f32 0.35355338, %v375_v38  ;;  %v496_v42 = vsel %vm489_vm2, %v483_v37, -inf  ;;  %v486_v50 = vadd.f32 %v480_v23, %v476_v40 }
 0x282   :  { %v1166_v43 = vpop.f32.mrf.mxu0  ;;  %497 = vmax.xlane.f32.xlu0 %v496_v42 }
 0x283   :  { %v485_v44 = vadd.f32 %v479_v26, %v475_v41  ;;  %v478_v47 = vmul.f32 0.35355338, %v1166_v43  ;;  %v505_v52 = vsel %vm489_vm2, %v486_v50, -inf }
 0x284   :  { %v462_v45 = vpop.f32.mrf.mxu0 }
 0x285   :  { %v477_v48 = vmul.f32 0.35355338, %v462_v45  ;;  %v502_v49 = vsel %vm489_vm2, %v485_v44, -inf  ;;  %v488_v54 = vadd.f32 %v480_v23, %v478_v47 }
 0x286   :  { %500 = vmax.xlane.f32.xlu0 %v499_v46  ;;  %503 = vmax.xlane.f32.xlu1 %v502_v49 }
 0x287   :  { %v487_v51 = vadd.f32 %v479_v26, %v477_v48  ;;  %v511_v55 = vsel %vm489_vm2, %v488_v54, -inf }
 0x289   :  { %v508_v53 = vsel %vm489_vm2, %v487_v51, -inf }
 0x28a   :  { %506 = vmax.xlane.f32.xlu0 %v505_v52  ;;  %509 = vmax.xlane.f32.xlu1 %v508_v53 }
 0x28e   :  { %512 = vmax.xlane.f32.xlu0 %v511_v55 }
 0x29b   :  { %580 = vrot.lane.b32.xlu1 %v1304_v6, %s1250_s2 }
 0x29f   :  { %667 = vrot.lane.b32.xlu1 %v1320_v9, %s1250_s2 }
 0x2a1   :  { %v495_v56 = vpop.xlane.xlu1 %494 }
 0x2a2   :  { %v515_v57 = vsub.f32 %v482_v28, %v495_v56 }
 0x2a3   :  { %665 = vrot.lane.b32.xlu1 %v1325_v11, %s1250_s2  ;;  %v492_v58 = vpop.xlane.xlu0 %491 }
 0x2a4   :  { %578 = vrot.lane.b32.xlu0 %v1308_v7, %s1250_s2  ;;  %v524_v59 = vmul.f32 1.442695, %v515_v57  ;;  %v514_v60 = vsub.f32 %v481_v30, %v492_v58 }
 0x2a6   :  { %1214 = vpow2.f32 %v524_v59  ;;  %v522_v61 = vmul.f32 1.442695, %v514_v60 }
 0x2a7   :  { %752 = vrot.lane.b32.xlu1 %v1323_v10, %s1250_s2 }
 0x2a8   :  { %754 = vrot.lane.b32.xlu0 %v1318_v8, %s1250_s2  ;;  %1216 = vpow2.f32 %v522_v61 }
 0x2b3   :  { %v1392_v62 = vpop.eup %1214 }
 0x2b4   :  { %v541_v63 = vsel %vm489_vm2, %v1392_v62, 0.0 }
 0x2b5   :  { %v1396_v0 = vpop.eup %1216 }
 0x2b6   :  { %v538_v1 = vsel %vm489_vm2, %v1396_v0, 0.0 }
 0x2c7   :  { %542 = vadd.xlane.f32.xlu0 %v541_v63 }
 0x2cb   :  { %539 = vadd.xlane.f32.xlu1 %v538_v1 }
 0x30b   :  { %v498_v2 = vpop.xlane.xlu0 %497 }
 0x30c   :  { %v516_v3 = vsub.f32 %v483_v37, %v498_v2  ;;  %v959_v2 = vld [vmem:[%s1450_s3 + $0x10] sm:$0xff] }
 0x30e   :  { %v526_v4 = vmul.f32 1.442695, %v516_v3  ;;  %v958_v3 = vld [vmem:[%s1450_s3 + $0x8] sm:$0xff] }
 0x30f   :  { %v501_v5 = vpop.xlane.xlu0 %500  ;;  %v504_v6 = vpop.xlane.xlu1 %503 }
 0x310   :  { %1218 = vpow2.f32 %v526_v4  ;;  %v517_v7 = vsub.f32 %v484_v39, %v501_v5  ;;  %v518_v8 = vsub.f32 %v485_v44, %v504_v6  ;;  %v957_v5 = vld [vmem:[%s1450_s3] sm:$0xff] }
 0x312   :  { %v528_v9 = vmul.f32 1.442695, %v517_v7  ;;  %v530_v10 = vmul.f32 1.442695, %v518_v8 }
 0x313   :  { %v507_v11 = vpop.xlane.xlu0 %506  ;;  %v510_v14 = vpop.xlane.xlu1 %509 }
 0x314   :  { %1220 = vpow2.f32 %v528_v9  ;;  %v519_v15 = vsub.f32 %v486_v50, %v507_v11  ;;  %v520_v16 = vsub.f32 %v487_v51, %v510_v14 }
 0x315   :  { %1222 = vpow2.f32 %v530_v10 }
 0x316   :  { %v532_v17 = vmul.f32 1.442695, %v519_v15  ;;  %v534_v18 = vmul.f32 1.442695, %v520_v16 }
 0x317   :  { %v513_v19 = vpop.xlane.xlu0 %512  ;;  %v581_v20 = vpop.permute.xlu1 %580 }
 0x318   :  { %1224 = vpow2.f32 %v532_v17  ;;  %v521_v21 = vsub.f32 %v488_v54, %v513_v19  ;;  %1167 = vmatprep.subr.mxu1 %v581_v20 }
 0x319   :  { %1226 = vpow2.f32 %v534_v18  ;;  %1168 = vmatpush3.msra.mxu1 %v581_v20 }
 0x31a   :  { %v536_v22 = vmul.f32 1.442695, %v521_v21 }
 0x31b   :  { %v579_v23 = vpop.permute.xlu0 %578  ;;  %v668_v25 = vpop.permute.xlu1 %667 }
 0x31c   :  { %1228 = vpow2.f32 %v536_v22  ;;  %1169 = vmatprep.subr.mxu1 %v579_v23 }
 0x31d   :  { %v1219_v24 = vpop.eup %1218  ;;  %1170 = vmatpush3.msra.mxu1 %v579_v23 }
 0x31e   :  { %1174 = vmatprep.subr.mxu1 %v668_v25  ;;  %v544_v26 = vsel %vm489_vm2, %v1219_v24, 0.0 }
 0x31f   :  { %545 = vadd.xlane.f32.xlu1 %v544_v26  ;;  %v666_v37 = vpop.permute.xlu1 %665  ;;  %v755_v38 = vpop.permute.xlu0 %754  ;;  %v1081_v26 = vld [vmem:[%s1451_s4] ss:$0 sm:$0xff] }
 0x321   :  { %v1221_v27 = vpop.eup %1220 }
 0x322   :  { %v1223_v28 = vpop.eup %1222  ;;  %v547_v29 = vsel %vm489_vm2, %v1221_v27, 0.0 }
 0x323   :  { %548 = vadd.xlane.f32.xlu0 %v547_v29  ;;  %v550_v30 = vsel %vm489_vm2, %v1223_v28, 0.0  ;;  %v753_v39 = vpop.permute.xlu1 %752 }
 0x324   :  { %551 = vadd.xlane.f32.xlu1 %v550_v30 }
 0x325   :  { %v1225_v31 = vpop.eup %1224 }
 0x326   :  { %v1227_v32 = vpop.eup %1226  ;;  %v553_v33 = vsel %vm489_vm2, %v1225_v31, 0.0 }
 0x327   :  { %554 = vadd.xlane.f32.xlu0 %v553_v33  ;;  %v556_v34 = vsel %vm489_vm2, %v1227_v32, 0.0 }
 0x328   :  { %557 = vadd.xlane.f32.xlu1 %v556_v34 }
 0x329   :  { %v1229_v35 = vpop.eup %1228 }
 0x32a   :  { %v559_v36 = vsel %vm489_vm2, %v1229_v35, 0.0 }
 0x32b   :  { %560 = vadd.xlane.f32.xlu0 %v559_v36 }
 0x339   :  { %839 = vrot.lane.b32.xlu1 %v1331_v12, %s1250_s2 }
 0x341   :  { %841 = vrot.lane.b32.xlu0 %v1333_v13, %s1250_s2 }
 0x350   :  { %v543_v40 = vpop.xlane.xlu0 %542 }
 0x351   :  { %1230 = vrcp.f32 %v543_v40 }
 0x354   :  { %v540_v41 = vpop.xlane.xlu1 %539 }
 0x355   :  { %1232 = vrcp.f32 %v540_v41 }
 0x35e   :  { %v1231_v42 = vpop.eup %1230 }
 0x35f   :  { %v571_v45 = vmul.f32 %v1231_v42, %v1392_v62 }
 0x362   :  { %v1233_v43 = vpop.eup %1232 }
 0x363   :  { %v570_v44 = vmul.f32 %v1233_v43, %v1396_v0  ;;  %v960_v0 = vld [vmem:[%s1450_s3 + $0x18] sm:$0xff] }
 0x364   :  { %1195 = vmatprep.subr.mxu0 %v960_v0 }
 0x365   :  { %1171 = vmatprep.mubr.msk.f32.mxu1 %vm489_vm2, %v570_v44  ;;  %1196 = vmatpush3.msra.mxu0 %v960_v0 }
 0x366   :  { %1172 = vmatmul.mubr.msk.f32.vlgmr.msra.gmra.mxu1 %vm489_vm2, %v571_v45  ;;  %1197 = vmatprep.subr.mxu0 %v959_v2 }
 0x367   :  { %1175 = vmatpush3.msra.mxu1 %v668_v25  ;;  %1198 = vmatpush3.msra.mxu0 %v959_v2 }
 0x368   :  { %1176 = vmatprep.subr.mxu1 %v666_v37  ;;  %1199 = vmatprep.subr.mxu0 %v958_v3 }
 0x369   :  { %1177 = vmatpush3.msra.mxu1 %v666_v37  ;;  %1200 = vmatpush3.msra.mxu0 %v958_v3 }
 0x36a   :  { %1181 = vmatprep.subr.mxu1 %v755_v38  ;;  %1201 = vmatprep.subr.mxu0 %v957_v5 }
 0x36b   :  { %1202 = vmatpush3.msra.mxu0 %v957_v5 }
 0x3a8   :  { %v546_v12 = vpop.xlane.xlu1 %545 }
 0x3a9   :  { %1234 = vrcp.f32 %v546_v12 }
 0x3ac   :  { %v549_v13 = vpop.xlane.xlu0 %548 }
 0x3ad   :  { %1236 = vrcp.f32 %v549_v13  ;;  %v552_v46 = vpop.xlane.xlu1 %551 }
 0x3ae   :  { %1238 = vrcp.f32 %v552_v46 }
 0x3b0   :  { %v555_v47 = vpop.xlane.xlu0 %554 }
 0x3b1   :  { %1240 = vrcp.f32 %v555_v47  ;;  %v558_v48 = vpop.xlane.xlu1 %557 }
 0x3b2   :  { %1242 = vrcp.f32 %v558_v48 }
 0x3b4   :  { %v561_v49 = vpop.xlane.xlu0 %560 }
 0x3b5   :  { %1244 = vrcp.f32 %v561_v49  ;;  %v840_v62 = vpop.permute.xlu1 %839 }
 0x3b6   :  { %v1235_v50 = vpop.eup %1234 }
 0x3b7   :  { %v572_v51 = vmul.f32 %v1235_v50, %v1219_v24 }
 0x3b8   :  { %v842_v59 = vpop.permute.xlu0 %841 }
 0x3b9   :  { %1178 = vmatprep.mubr.msk.f32.mxu1 %vm489_vm2, %v572_v51 }
 0x3ba   :  { %v1237_v52 = vpop.eup %1236 }
 0x3bb   :  { %v1239_v53 = vpop.eup %1238  ;;  %v573_v54 = vmul.f32 %v1237_v52, %v1221_v27 }
 0x3bc   :  { %v574_v55 = vmul.f32 %v1239_v53, %v1223_v28 }
 0x3bd   :  { %1179 = vmatmul.mubr.msk.f32.vlgmr.msra.gmra.mxu1 %vm489_vm2, %v573_v54 }
 0x3be   :  { %v1241_v56 = vpop.eup %1240  ;;  %1182 = vmatpush3.msra.mxu1 %v755_v38  ;;  %1185 = vmatprep.mubr.msk.f32.mxu1 %vm489_vm2, %v574_v55 }
 0x3bf   :  { %v1243_v57 = vpop.eup %1242  ;;  %1183 = vmatprep.subr.mxu1 %v753_v39  ;;  %v575_v58 = vmul.f32 %v1241_v56, %v1225_v31 }
 0x3c0   :  { %1184 = vmatpush3.msra.mxu1 %v753_v39  ;;  %v576_v60 = vmul.f32 %v1243_v57, %v1227_v32 }
 0x3c1   :  { %1188 = vmatprep.subr.mxu1 %v842_v59  ;;  %1186 = vmatmul.mubr.msk.f32.vlgmr.msra.gmra.mxu1 %vm489_vm2, %v575_v58 }
 0x3c2   :  { %v1245_v61 = vpop.eup %1244  ;;  %1189 = vmatpush3.msra.mxu1 %v842_v59  ;;  %1192 = vmatprep.mubr.msk.f32.mxu1 %vm489_vm2, %v576_v60 }
 0x3c3   :  { %1190 = vmatprep.subr.mxu1 %v840_v62  ;;  %v577_v63 = vmul.f32 %v1245_v61, %v1229_v35 }
 0x3c4   :  { %1191 = vmatpush3.msra.mxu1 %v840_v62 }
 0x3c5   :  { %1193 = vmatmul.mubr.msk.f32.vlgmr.msra.gmra.mxu1 %vm489_vm2, %v577_v63 }
 0x426   :  { %v1173_v1 = vpop.f32.mrf.mxu1 }
 0x428   :  { %v656_v4 = vpop.f32.mrf.mxu1 }
 0x47d   :  { %v1180_v6 = vpop.f32.mrf.mxu1 }
 0x47e   :  { %930 = vrot.lane.b32.xlu1 %v1180_v6, %s1251_s19 }
 0x47f   :  { %v743_v7 = vpop.f32.mrf.mxu1 }
 0x480   :  { %928 = vrot.lane.b32.xlu0 %v743_v7, %s1251_s19 }
 0x481   :  { %v1187_v8 = vpop.f32.mrf.mxu1 }
 0x482   :  { %938 = vrot.lane.b32.xlu1 %v1187_v8, %s1252_s20 }
 0x483   :  { %v830_v9 = vpop.f32.mrf.mxu1 }
 0x484   :  { %936 = vrot.lane.b32.xlu0 %v830_v9, %s1252_s20 }
 0x485   :  { %v1194_v10 = vpop.f32.mrf.mxu1 }
 0x486   :  { %946 = vrot.lane.b32.xlu1 %v1194_v10, %s1253_s21 }
 0x487   :  { %v917_v11 = vpop.f32.mrf.mxu1 }
 0x488   :  { %944 = vrot.lane.b32.xlu0 %v917_v11, %s1253_s21 }
 0x4f0   :  { %v931_v14 = vpop.permute.xlu1 %930 }
 0x4f1   :  { %v951_v20 = vsel %vm126_vm1, %v1173_v1, %v931_v14 }
 0x4f2   :  { %v929_v15 = vpop.permute.xlu0 %928 }
 0x4f3   :  { %v950_v18 = vsel %vm126_vm1, %v656_v4, %v929_v15 }
 0x4f4   :  { %v939_v16 = vpop.permute.xlu1 %938 }
 0x4f5   :  { %v953_v23 = vsel %vm489_vm2, %v951_v20, %v939_v16 }
 0x4f6   :  { %v937_v17 = vpop.permute.xlu0 %936 }
 0x4f7   :  { %v952_v21 = vsel %vm489_vm2, %v950_v18, %v937_v17 }
 0x4f8   :  { %v947_v19 = vpop.permute.xlu1 %946 }
 0x4f9   :  { %v956_v25 = vsel %vm954_vm3, %v953_v23, %v947_v19 }
 0x4fa   :  { %v945_v22 = vpop.permute.xlu0 %944 }
 0x4fb   :  { %v955_v24 = vsel %vm954_vm3, %v952_v21, %v945_v22 }
 0x4fc   :  { %1203 = vmatprep.mubr.msk.f32.mxu0 %vm26_vm0, %v955_v24 }
 0x4fd   :  { %1204 = vmatmul.mubr.msk.f32.vlgmr.msra.gmra.mxu0 %vm26_vm0, %v956_v25 }
 0x5bd   :  { %v1205_v27 = vpop.f32.mrf.mxu0 }
 0x5be   :  { %v1046_v28 = vadd.f32 %v1205_v27, %v1081_v26 }
 0x5bf   :  { %v1040_v29 = vpop.f32.mrf.mxu0 }
 0x5c0   :  { %1050 = vst [vmem:[%s1452_s5 + $0x8] sm:$0xff] %v1046_v28  ;;  %v1041_v30 = vadd.f32 %v1081_v26, %v1040_v29 }
 0x5c2   :  { %1049 = vst [vmem:[%s1452_s5] sm:$0xff] %v1041_v30 }

</bundles_post_ra>
